<compile_context>
chip_gen: v7x
topology: tpu7x:2x2x1
jax: 0.10.0
libtpu: 0.0.40
codegen_flags: <defaults>
</compile_context>

<pallas_src>
import jax
import jax.numpy as jnp
from jax.experimental import pallas as pl
from jax.experimental.pallas import tpu as pltpu


def _round_up(x, m):
    return ((x + m - 1) // m) * m


def _pick_tile_n(N_x, B_p, max_tile_n=4096):
    """Lane-dense tile along N_x: multiple of 128, >=2 grid steps when possible,
    double-buffered (B_p, tile_n) f32 output tile kept under a VMEM budget."""
    if N_x <= 128:
        # Single full-extent block (block shape == full array dims), no padding.
        return N_x
    t = min(max_tile_n, _round_up(N_x, 128))
    # Ensure >= 2 grid steps so v7x's second TensorCore gets work.
    half = _round_up(pl.cdiv(N_x, 2), 128)
    t = min(t, max(half, 128))
    # Keep 2x (double-buffered) B_p x tile_n x 4B output tiles under ~8 MiB.
    vmem_cap = max(128, ((8 * 1024 * 1024) // (8 * max(B_p, 1))) // 128 * 128)
    t = min(t, vmem_cap)
    return max(t, 128)


def _branch_forward(P_input, branch_params):
    """Tiny branch MLP — left to XLA (a few us of work, no Pallas launch)."""
    h = P_input.astype(jnp.float32)
    for w, b in branch_params:
        h = jnp.tanh(h @ w + b)
    return h


def make_trunk_outer_kernel(trunk_depth, X_dim):
    """Ref order:
       branch_ref (B_p, width) resident,
       [w_T_i (width,in), b_T_i (width,1)] * trunk_depth   resident,
       x_ref (X_dim, tile_n) tile,
       out_ref (B_p, tile_n) tile.
    Trunk activations stay in the lane-dense (width, tile_n) layout."""

    def kernel(*refs):
        branch_ref = refs[0]
        x_ref = refs[1 + 2 * trunk_depth]
        out_ref = refs[2 + 2 * trunk_depth]

        t = x_ref[...]
        if t.dtype != jnp.float32:
            t = t.astype(jnp.float32)

        idx = 1
        for layer in range(trunk_depth):
            w_t = refs[idx][...]      # (width, in)
            b_t = refs[idx + 1][...]  # (width, 1)
            idx += 2
            if layer == 0 and X_dim == 1:
                # (width,1) * (1,tile_n) + (width,1): sublane broadcast on the
                # VPU/EUP, no degenerate K=1 MXU matmul.
                t = jnp.tanh(w_t * t + b_t)
            else:
                t = jnp.tanh(
                    jnp.dot(w_t, t, preferred_element_type=jnp.float32) + b_t
                )

        h = branch_ref[...]
        if h.dtype != jnp.float32:
            h = h.astype(jnp.float32)
        # Final contraction: (B_p, width) @ (width, tile_n) -> lane-dense output.
        out_ref[...] = jnp.dot(h, t, preferred_element_type=jnp.float32)

    return kernel


def deeponet_forward(P_input, X_input, branch_params, trunk_params, *, max_tile_n=4096):
    """branch_params / trunk_params: list of (W, b), W:(in,out), b:(1,out)."""
    B_p, param_dim = P_input.shape
    N_x, X_dim = X_input.shape
    width = trunk_params[-1][0].shape[1]

    # Branch net once, outside the grid.
    branch_out = _branch_forward(P_input, branch_params)          # (B_p, width)

    # Transposed trunk operands for the lane-dense (width, tile_n) layout.
    X_t = jnp.transpose(X_input)                                   # (X_dim, N_x)
    trunk_t = [(jnp.transpose(w), jnp.transpose(b)) for (w, b) in trunk_params]

    tile_n = _pick_tile_n(N_x, B_p, max_tile_n)
    grid = (pl.cdiv(N_x, tile_n),)

    args = [branch_out]
    specs = [pl.BlockSpec((B_p, width), lambda i: (0, 0))]         # resident
    for w_t, b_t in trunk_t:
        args += [w_t, b_t]
        specs += [
            pl.BlockSpec(w_t.shape, lambda i: (0, 0)),             # resident
            pl.BlockSpec(b_t.shape, lambda i: (0, 0)),             # resident
        ]
    args.append(X_t)
    specs.append(pl.BlockSpec((X_dim, tile_n), lambda i: (0, i)))  # N_x tiles

    out = pl.pallas_call(
        make_trunk_outer_kernel(len(trunk_params), X_dim),
        out_shape=jax.ShapeDtypeStruct((B_p, N_x), jnp.float32),
        grid=grid,
        in_specs=specs,
        out_specs=pl.BlockSpec((B_p, tile_n), lambda i: (0, i)),
        compiler_params=pltpu.CompilerParams(
            dimension_semantics=("parallel",),   # shard N_x tiles across TCs (v7x)
            vmem_limit_bytes=32 * 1024 * 1024,   # safe on v5e/v6e/v7x at these tiles
        ),
    )(*args)
    return out


# ----------------------------- test harness ---------------------------------


def init_subnet(key, input_dim, width, depth):
    """Deterministic init mirroring nn.Linear shapes; (in, out) layout."""
    params = []
    dims = [input_dim] + [width] * depth
    for i in range(depth):
        key, kw, kb = jax.random.split(key, 3)
        fan_in = dims[i]
        bound = 1.0 / jnp.sqrt(jnp.asarray(fan_in, jnp.float32))
        w = jax.random.uniform(kw, (dims[i], dims[i + 1]), jnp.float32, -bound, bound)
        b = jax.random.uniform(kb, (1, dims[i + 1]), jnp.float32, -bound, bound)
        params.append((w, b))
    return key, params


def reference_forward(P_input, X_input, branch_params, trunk_params):
    h = P_input
    for w, b in branch_params:
        h = jnp.tanh(h @ w + b)
    t = X_input
    for w, b in trunk_params:
        t = jnp.tanh(t @ w + b)
    return (t @ h.T).T


if __name__ == "__main__":
    # Module defaults: param_dim=1, X_dim=1, width=64, branch_depth=4, trunk_depth=4
    param_dim, X_dim = 1, 1
    width, branch_depth, trunk_depth = 64, 4, 4

    key = jax.random.PRNGKey(0)
    key, branch_params = init_subnet(key, param_dim, width, branch_depth)
    key, trunk_params = init_subnet(key, X_dim, width, trunk_depth)

    # Case 1: tiny shapes (single full-extent block).
    B_p, N_x = 2, 16
    key, kp, kx = jax.random.split(key, 3)
    P_input = jax.random.normal(kp, (B_p, param_dim), jnp.float32)
    X_input = jax.random.normal(kx, (N_x, X_dim), jnp.float32)

    out = deeponet_forward(P_input, X_input, branch_params, trunk_params)
    out = jax.block_until_ready(out)
    ref = reference_forward(P_input, X_input, branch_params, trunk_params)
    assert out.shape == (B_p, N_x), out.shape
    assert jnp.allclose(out, ref, atol=1e-4, rtol=1e-4), "mismatch vs JAX reference (case 1)"

    # Case 2: multi-tile grid with a partial edge tile (exercises megacore
    # sharding and edge-block masking of the output writeback).
    B_p2, N_x2 = 3, 300
    key, kp2, kx2 = jax.random.split(key, 3)
    P_input2 = jax.random.normal(kp2, (B_p2, param_dim), jnp.float32)
    X_input2 = jax.random.normal(kx2, (N_x2, X_dim), jnp.float32)

    out2 = deeponet_forward(P_input2, X_input2, branch_params, trunk_params)
    out2 = jax.block_until_ready(out2)
    ref2 = reference_forward(P_input2, X_input2, branch_params, trunk_params)
    assert out2.shape == (B_p2, N_x2), out2.shape
    assert jnp.allclose(out2, ref2, atol=1e-4, rtol=1e-4), "mismatch vs JAX reference (case 2)"

    print("KERNEL_OK")
</pallas_src>

<mosaic_0001>
module attributes {stable_mosaic.version = 11 : i64} {
  func.func @kernel(%arg0: i32, %arg1: memref<2x64xf32, #tpu.memory_space<vmem>>, %arg2: memref<64x1xf32, #tpu.memory_space<vmem>>, %arg3: memref<64x1xf32, #tpu.memory_space<vmem>>, %arg4: memref<64x64xf32, #tpu.memory_space<vmem>>, %arg5: memref<64x1xf32, #tpu.memory_space<vmem>>, %arg6: memref<64x64xf32, #tpu.memory_space<vmem>>, %arg7: memref<64x1xf32, #tpu.memory_space<vmem>>, %arg8: memref<64x64xf32, #tpu.memory_space<vmem>>, %arg9: memref<64x1xf32, #tpu.memory_space<vmem>>, %arg10: memref<1x16xf32, #tpu.memory_space<vmem>>, %arg11: memref<2x16xf32, #tpu.memory_space<vmem>>) attributes {dimension_semantics = [#tpu.dimension_semantics<parallel>], iteration_bounds = array<i64: 1>, scalar_prefetch = 0 : i64, scratch_operands = 0 : i64, tpu.core_type = #tpu.core_type<tc>, window_params = [{pipeline_mode = #tpu.pipeline_mode<synchronous>, transform_indices = @transform_0, window_bounds = array<i64: 2, 64>}, {pipeline_mode = #tpu.pipeline_mode<synchronous>, transform_indices = @transform_1, window_bounds = array<i64: 64, 1>}, {pipeline_mode = #tpu.pipeline_mode<synchronous>, transform_indices = @transform_2, window_bounds = array<i64: 64, 1>}, {pipeline_mode = #tpu.pipeline_mode<synchronous>, transform_indices = @transform_3, window_bounds = array<i64: 64, 64>}, {pipeline_mode = #tpu.pipeline_mode<synchronous>, transform_indices = @transform_4, window_bounds = array<i64: 64, 1>}, {pipeline_mode = #tpu.pipeline_mode<synchronous>, transform_indices = @transform_5, window_bounds = array<i64: 64, 64>}, {pipeline_mode = #tpu.pipeline_mode<synchronous>, transform_indices = @transform_6, window_bounds = array<i64: 64, 1>}, {pipeline_mode = #tpu.pipeline_mode<synchronous>, transform_indices = @transform_7, window_bounds = array<i64: 64, 64>}, {pipeline_mode = #tpu.pipeline_mode<synchronous>, transform_indices = @transform_8, window_bounds = array<i64: 64, 1>}, {transform_indices = @transform_9, window_bounds = array<i64: 1, 16>}, {transform_indices = @transform_10, window_bounds = array<i64: 2, 16>}]} {
    %c0 = arith.constant 0 : index
    %c0_0 = arith.constant 0 : index
    %0 = vector.load %arg10[%c0, %c0_0] : memref<1x16xf32, #tpu.memory_space<vmem>>, vector<1x16xf32>
    %c0_1 = arith.constant 0 : index
    %c0_2 = arith.constant 0 : index
    %1 = vector.load %arg2[%c0_1, %c0_2] : memref<64x1xf32, #tpu.memory_space<vmem>>, vector<64x1xf32>
    %c0_3 = arith.constant 0 : index
    %c0_4 = arith.constant 0 : index
    %2 = vector.load %arg3[%c0_3, %c0_4] : memref<64x1xf32, #tpu.memory_space<vmem>>, vector<64x1xf32>
    %3 = vector.broadcast %1 : vector<64x1xf32> to vector<64x16xf32>
    %4 = vector.broadcast %0 : vector<1x16xf32> to vector<64x16xf32>
    %5 = arith.mulf %3, %4 : vector<64x16xf32>
    %6 = vector.broadcast %2 : vector<64x1xf32> to vector<64x16xf32>
    %7 = arith.addf %5, %6 : vector<64x16xf32>
    %8 = math.tanh %7 : vector<64x16xf32>
    %c0_5 = arith.constant 0 : index
    %c0_6 = arith.constant 0 : index
    %9 = vector.load %arg4[%c0_5, %c0_6] : memref<64x64xf32, #tpu.memory_space<vmem>>, vector<64x64xf32>
    %c0_7 = arith.constant 0 : index
    %c0_8 = arith.constant 0 : index
    %10 = vector.load %arg5[%c0_7, %c0_8] : memref<64x1xf32, #tpu.memory_space<vmem>>, vector<64x1xf32>
    %cst = arith.constant dense<0.000000e+00> : vector<64x16xf32>
    %11 = tpu.matmul %9, %8, %cst {dimension_numbers = #tpu.dot_dimension_numbers<[1], [0], [0], [1], [0, 0, 1, 1], [], []>} : vector<64x64xf32>, vector<64x16xf32>, vector<64x16xf32> -> vector<64x16xf32>
    %12 = vector.broadcast %10 : vector<64x1xf32> to vector<64x16xf32>
    %13 = arith.addf %11, %12 : vector<64x16xf32>
    %14 = math.tanh %13 : vector<64x16xf32>
    %c0_9 = arith.constant 0 : index
    %c0_10 = arith.constant 0 : index
    %15 = vector.load %arg6[%c0_9, %c0_10] : memref<64x64xf32, #tpu.memory_space<vmem>>, vector<64x64xf32>
    %c0_11 = arith.constant 0 : index
    %c0_12 = arith.constant 0 : index
    %16 = vector.load %arg7[%c0_11, %c0_12] : memref<64x1xf32, #tpu.memory_space<vmem>>, vector<64x1xf32>
    %cst_13 = arith.constant dense<0.000000e+00> : vector<64x16xf32>
    %17 = tpu.matmul %15, %14, %cst_13 {dimension_numbers = #tpu.dot_dimension_numbers<[1], [0], [0], [1], [0, 0, 1, 1], [], []>} : vector<64x64xf32>, vector<64x16xf32>, vector<64x16xf32> -> vector<64x16xf32>
    %18 = vector.broadcast %16 : vector<64x1xf32> to vector<64x16xf32>
    %19 = arith.addf %17, %18 : vector<64x16xf32>
    %20 = math.tanh %19 : vector<64x16xf32>
    %c0_14 = arith.constant 0 : index
    %c0_15 = arith.constant 0 : index
    %21 = vector.load %arg8[%c0_14, %c0_15] : memref<64x64xf32, #tpu.memory_space<vmem>>, vector<64x64xf32>
    %c0_16 = arith.constant 0 : index
    %c0_17 = arith.constant 0 : index
    %22 = vector.load %arg9[%c0_16, %c0_17] : memref<64x1xf32, #tpu.memory_space<vmem>>, vector<64x1xf32>
    %cst_18 = arith.constant dense<0.000000e+00> : vector<64x16xf32>
    %23 = tpu.matmul %21, %20, %cst_18 {dimension_numbers = #tpu.dot_dimension_numbers<[1], [0], [0], [1], [0, 0, 1, 1], [], []>} : vector<64x64xf32>, vector<64x16xf32>, vector<64x16xf32> -> vector<64x16xf32>
    %24 = vector.broadcast %22 : vector<64x1xf32> to vector<64x16xf32>
    %25 = arith.addf %23, %24 : vector<64x16xf32>
    %26 = math.tanh %25 : vector<64x16xf32>
    %c0_19 = arith.constant 0 : index
    %c0_20 = arith.constant 0 : index
    %27 = vector.load %arg1[%c0_19, %c0_20] : memref<2x64xf32, #tpu.memory_space<vmem>>, vector<2x64xf32>
    %cst_21 = arith.constant dense<0.000000e+00> : vector<2x16xf32>
    %28 = tpu.matmul %27, %26, %cst_21 {dimension_numbers = #tpu.dot_dimension_numbers<[1], [0], [0], [1], [0, 0, 1, 1], [], []>} : vector<2x64xf32>, vector<64x16xf32>, vector<2x16xf32> -> vector<2x16xf32>
    %c0_22 = arith.constant 0 : index
    %c0_23 = arith.constant 0 : index
    %29 = vector.load %arg11[%c0_22, %c0_23] : memref<2x16xf32, #tpu.memory_space<vmem>>, vector<2x16xf32>
    tpu.vector_store %arg11[%c0_22, %c0_23], %28 {strides = array<i32>} : memref<2x16xf32, #tpu.memory_space<vmem>>, vector<2x16xf32>,
    return
  }
  func.func @transform_0(%arg0: i32) -> (i32, i32) {
    %c0_i32 = arith.constant 0 : i32
    %c0_i32_0 = arith.constant 0 : i32
    %c0_i32_1 = arith.constant 0 : i32
    return %c0_i32, %c0_i32_0 : i32, i32
  }
  func.func @transform_1(%arg0: i32) -> (i32, i32) {
    %c0_i32 = arith.constant 0 : i32
    %c0_i32_0 = arith.constant 0 : i32
    %c0_i32_1 = arith.constant 0 : i32
    return %c0_i32, %c0_i32_0 : i32, i32
  }
  func.func @transform_2(%arg0: i32) -> (i32, i32) {
    %c0_i32 = arith.constant 0 : i32
    %c0_i32_0 = arith.constant 0 : i32
    %c0_i32_1 = arith.constant 0 : i32
    return %c0_i32, %c0_i32_0 : i32, i32
  }
  func.func @transform_3(%arg0: i32) -> (i32, i32) {
    %c0_i32 = arith.constant 0 : i32
    %c0_i32_0 = arith.constant 0 : i32
    %c0_i32_1 = arith.constant 0 : i32
    return %c0_i32, %c0_i32_0 : i32, i32
  }
  func.func @transform_4(%arg0: i32) -> (i32, i32) {
    %c0_i32 = arith.constant 0 : i32
    %c0_i32_0 = arith.constant 0 : i32
    %c0_i32_1 = arith.constant 0 : i32
    return %c0_i32, %c0_i32_0 : i32, i32
  }
  func.func @transform_5(%arg0: i32) -> (i32, i32) {
    %c0_i32 = arith.constant 0 : i32
    %c0_i32_0 = arith.constant 0 : i32
    %c0_i32_1 = arith.constant 0 : i32
    return %c0_i32, %c0_i32_0 : i32, i32
  }
  func.func @transform_6(%arg0: i32) -> (i32, i32) {
    %c0_i32 = arith.constant 0 : i32
    %c0_i32_0 = arith.constant 0 : i32
    %c0_i32_1 = arith.constant 0 : i32
    return %c0_i32, %c0_i32_0 : i32, i32
  }
  func.func @transform_7(%arg0: i32) -> (i32, i32) {
    %c0_i32 = arith.constant 0 : i32
    %c0_i32_0 = arith.constant 0 : i32
    %c0_i32_1 = arith.constant 0 : i32
    return %c0_i32, %c0_i32_0 : i32, i32
  }
  func.func @transform_8(%arg0: i32) -> (i32, i32) {
    %c0_i32 = arith.constant 0 : i32
    %c0_i32_0 = arith.constant 0 : i32
    %c0_i32_1 = arith.constant 0 : i32
    return %c0_i32, %c0_i32_0 : i32, i32
  }
  func.func @transform_9(%arg0: i32) -> (i32, i32) {
    %c0_i32 = arith.constant 0 : i32
    %c0_i32_0 = arith.constant 0 : i32
    return %c0_i32, %arg0 : i32, i32
  }
  func.func @transform_10(%arg0: i32) -> (i32, i32) {
    %c0_i32 = arith.constant 0 : i32
    %c0_i32_0 = arith.constant 0 : i32
    return %c0_i32, %arg0 : i32, i32
  }
}

</mosaic_0001>

<bundles_post_ra>
// kernel: tpu_custom_call.1
= control target key start
LH: loop header
LB: loop body
LE: loop exit
PB: predicated region body
PF: predicated region fallthrough
CT: control target
= control target key end

     0   :  { %v1174_v2 = vmov 0   ;;  %s1469_s0 = inlined_call_operand.vmem [shape: f32[2,64], index: 0, kind: input, shape index: {}]   ;;  %s1470_s1 = inlined_call_operand.vmem [shape: f32[64,1], index: 1, kind: input, shape index: {}]   ;;  %s1471_s2 = inlined_call_operand.vmem [shape: f32[64,1], index: 2, kind: input, shape index: {}]   ;;  %s1472_s3 = inlined_call_operand.vmem [shape: f32[64,64], index: 3, kind: input, shape index: {}]   ;;  %s1473_s4 = inlined_call_operand.vmem [shape: f32[64,1], index: 4, kind: input, shape index: {}]   ;;  %s1474_s5 = inlined_call_operand.vmem [shape: f32[64,64], index: 5, kind: input, shape index: {}]   ;;  %s1475_s6 = inlined_call_operand.vmem [shape: f32[64,1], index: 6, kind: input, shape index: {}]   ;;  %s1476_s7 = inlined_call_operand.vmem [shape: f32[64,64], index: 7, kind: input, shape index: {}]   ;;  %s1477_s8 = inlined_call_operand.vmem [shape: f32[64,1], index: 8, kind: input, shape index: {}]   ;;  %s1478_s9 = inlined_call_operand.vmem [shape: f32[1,16], index: 9, kind: input, shape index: {}]   ;;  %s1479_s10 = inlined_call_operand.hbm [shape: f32[2,16], index: 10, kind: output, shape index: {}]  }
   0x1   :  { %v45_v0 = vld [vmem:[%s1471_s2] sm:$0xff]  ;;  %1085 = vset.pattern.permute.xlu1 %v1174_v2  ;;  %1084 = vset.pattern.permute.xlu0 %v1174_v2  ;;  %v46_v3 = vld [vmem:[%s1471_s2 + $0x8] sm:$0xff]  ;;  %v40_v5 = vld [vmem:[%s1470_s1 + $0x18] sm:$0xff] }
   0x2   :  { %v37_v1 = vld [vmem:[%s1470_s1] sm:$0xff]  ;;  %109 = vperm.xlu1 %1085, %v45_v0   ;;  %v38_v4 = vld [vmem:[%s1470_s1 + $0x8] sm:$0xff]  ;;  %v39_v6 = vld [vmem:[%s1470_s1 + $0x10] sm:$0xff] }
   0x3   :  { %55 = vperm.xlu0 %1084, %v37_v1   ;;  %v48_v7 = vld [vmem:[%s1471_s2 + $0x18] sm:$0xff]  ;;  %v47_v8 = vld [vmem:[%s1471_s2 + $0x10] sm:$0xff] }
   0x6   :  { %114 = vperm.xlu1 %1085, %v46_v3  }
   0x7   :  { %60 = vperm.xlu0 %1084, %v38_v4  }
   0xa   :  { %70 = vperm.xlu1 %1085, %v40_v5  }
   0xb   :  { %65 = vperm.xlu0 %1084, %v39_v6  }
   0xc   :  { %15 = vsyncpa [#allocation3], 0  ;;  %v42_v9 = vld [vmem:[%s1470_s1 + $0x28] sm:$0xff]  ;;  %v41_v10 = vld [vmem:[%s1470_s1 + $0x20] sm:$0xff]  ;;  %vm219_vm0 = vcmask 523264   ;;  %vm1176_vm1 = vmmov 0  }
   0xd   :  { %v50_v11 = vld [vmem:[%s1471_s2 + $0x28] sm:$0xff]  ;;  %v49_v12 = vld [vmem:[%s1471_s2 + $0x20] sm:$0xff]  ;;  %v44_v13 = vld [vmem:[%s1470_s1 + $0x38] sm:$0xff]  ;;  %s1178_s23 = smov [#allocation2]   ;;  %vm817_vm2 = vcmask 123904  }
   0xe   :  { %124 = vperm.xlu1 %1085, %v48_v7   ;;  %v43_v14 = vld [vmem:[%s1470_s1 + $0x30] sm:$0xff]  ;;  %v52_v15 = vld [vmem:[%s1471_s2 + $0x38] sm:$0xff]  ;;  %v172_v17 = vld [vmem:[%s1473_s4 + $0x8] sm:$0xff]  ;;  %s825_s24 = sshll.u32 %s1178_s23, 4  ;;  %s826_s24 = int_to_ptr.vmem [resolvable:$true] %s825_s24 }
   0xf   :  { %119 = vperm.xlu0 %1084, %v47_v8   ;;  %v51_v16 = vld [vmem:[%s1471_s2 + $0x30] sm:$0xff]  ;;  %v171_v18 = vld [vmem:[%s1473_s4] sm:$0xff]  ;;  %v174_v19 = vld [vmem:[%s1473_s4 + $0x18] sm:$0xff]  ;;  %p1155_p1 = scmp.lt.s32.totalorder %s826_s24, %s826_s24 }
  0x10   :  { %v173_v20 = vld [vmem:[%s1473_s4 + $0x10] sm:$0xff]  ;;  %v176_v21 = vld [vmem:[%s1473_s4 + $0x28] sm:$0xff]  ;;  %v175_v22 = vld [vmem:[%s1473_s4 + $0x20] sm:$0xff] }
  0x11   :  { %v178_v23 = vld [vmem:[%s1473_s4 + $0x38] sm:$0xff]  ;;  %v177_v24 = vld [vmem:[%s1473_s4 + $0x30] sm:$0xff]  ;;  %v366_v25 = vld [vmem:[%s1475_s6 + $0x8] sm:$0xff]  ;;  %s1150_s4 = scalar_lea.vmem %s826_s24, 32 }
  0x12   :  { %80 = vperm.xlu1 %1085, %v42_v9   ;;  %v365_v26 = vld [vmem:[%s1475_s6] sm:$0xff]  ;;  %v368_v28 = vld [vmem:[%s1475_s6 + $0x18] sm:$0xff]  ;;  %v367_v29 = vld [vmem:[%s1475_s6 + $0x10] sm:$0xff]  ;;  %p1151_p0 = scmp.ne.s32.totalorder %s826_s24, %s1150_s4  ;;  %p1156_p2 = scmp.lt.s32.totalorder %s1150_s4, %s1150_s4 }
  0x13   :  { %75 = vperm.xlu0 %1084, %v41_v10   ;;  %v163_v27 = vld [vmem:[%s1472_s3] sm:$0xff]  ;;  %v370_v30 = vld [vmem:[%s1475_s6 + $0x28] sm:$0xff]  ;;  %v372_v32 = vld [vmem:[%s1475_s6 + $0x38] sm:$0xff] }
  0x14   :  { %932 = vmatprep.mubr.msk.f32.mxu0 %vm219_vm0, %v163_v27  ;;  %v369_v31 = vld [vmem:[%s1475_s6 + $0x20] sm:$0xff]  ;;  %v371_v33 = vld [vmem:[%s1475_s6 + $0x30] sm:$0xff]  ;;  %v559_v34 = vld [vmem:[%s1477_s8 + $0x8] sm:$0xff]  ;;  %p1157_p3 = por %p1156_p2, %p1155_p1 }
  0x15   :  { %v558_v35 = vld [vmem:[%s1477_s8] sm:$0xff]  ;;  %v561_v36 = vld [vmem:[%s1477_s8 + $0x18] sm:$0xff]  ;;  %v560_v37 = vld [vmem:[%s1477_s8 + $0x10] sm:$0xff] }
  0x16   :  { %134 = vperm.xlu1 %1085, %v50_v11   ;;  %v563_v38 = vld [vmem:[%s1477_s8 + $0x28] sm:$0xff]  ;;  %v562_v39 = vld [vmem:[%s1477_s8 + $0x20] sm:$0xff]  ;;  %v565_v40 = vld [vmem:[%s1477_s8 + $0x38] sm:$0xff]  ;;  %p1158_p4 = pnand %p1157_p3, %p1151_p0 }
  0x17   :  { %129 = vperm.xlu0 %1084, %v49_v12   ;;  %v564_v41 = vld [vmem:[%s1477_s8 + $0x30] sm:$0xff]  ;;  %v833_v42 = vld [vmem:[%s1478_s9] ss:$0 sm:$0xff]  ;;  %v168_v27 = vld [vmem:[%s1472_s3 + $0x28] sm:$0xff] }
  0x1a   :  { %90 = vperm.xlu1 %1085, %v44_v13  }
  0x1b   :  { %85 = vperm.xlu0 %1084, %v43_v14  }
  0x1e   :  { %144 = vperm.xlu1 %1085, %v52_v15  }
  0x1f   :  { %139 = vperm.xlu0 %1084, %v51_v16  }
  0x22   :  { %186 = vperm.xlu1 %1085, %v172_v17  }
  0x23   :  { %181 = vperm.xlu0 %1084, %v171_v18  }
  0x26   :  { %196 = vperm.xlu1 %1085, %v174_v19  }
  0x27   :  { %191 = vperm.xlu0 %1084, %v173_v20  }
  0x2a   :  { %206 = vperm.xlu1 %1085, %v176_v21  }
  0x2b   :  { %201 = vperm.xlu0 %1084, %v175_v22  }
  0x2e   :  { %216 = vperm.xlu1 %1085, %v178_v23   ;;  %v164_v23 = vld [vmem:[%s1472_s3 + $0x8] sm:$0xff] }
  0x2f   :  { %211 = vperm.xlu0 %1084, %v177_v24   ;;  %v165_v24 = vld [vmem:[%s1472_s3 + $0x10] sm:$0xff] }
  0x32   :  { %380 = vperm.xlu1 %1085, %v366_v25   ;;  %v166_v25 = vld [vmem:[%s1472_s3 + $0x18] sm:$0xff] }
  0x33   :  { %375 = vperm.xlu0 %1084, %v365_v26   ;;  %v167_v26 = vld [vmem:[%s1472_s3 + $0x20] sm:$0xff] }
  0x36   :  { %390 = vperm.xlu1 %1085, %v368_v28   ;;  %v169_v28 = vld [vmem:[%s1472_s3 + $0x30] sm:$0xff] }
  0x37   :  { %385 = vperm.xlu0 %1084, %v367_v29   ;;  %v170_v29 = vld [vmem:[%s1472_s3 + $0x38] sm:$0xff] }
  0x3a   :  { %400 = vperm.xlu1 %1085, %v370_v30   ;;  %v357_v30 = vld [vmem:[%s1474_s5] sm:$0xff] }
  0x3b   :  { %395 = vperm.xlu0 %1084, %v369_v31   ;;  %960 = vmatprep.mubr.msk.f32.mxu1 %vm219_vm0, %v357_v30 }
  0x3e   :  { %410 = vperm.xlu1 %1085, %v372_v32  }
  0x3f   :  { %405 = vperm.xlu0 %1084, %v371_v33  }
  0x42   :  { %573 = vperm.xlu1 %1085, %v559_v34  }
  0x43   :  { %568 = vperm.xlu0 %1084, %v558_v35  }
  0x46   :  { %583 = vperm.xlu1 %1085, %v561_v36  }
  0x47   :  { %578 = vperm.xlu0 %1084, %v560_v37  }
  0x4a   :  { %593 = vperm.xlu1 %1085, %v563_v38  }
  0x4b   :  { %588 = vperm.xlu0 %1084, %v562_v39  }
  0x4e   :  { %603 = vperm.xlu1 %1085, %v565_v40  }
  0x4f   :  { %598 = vperm.xlu0 %1084, %v564_v41  }
  0x81   :  { %v110_v43 = vpop.permute.xlu1 %109 }
  0x82   :  { %v56_v44 = vpop.permute.xlu0 %55 }
  0x83   :  { %v99_v45 = vmul.f32 %v833_v42, %v56_v44 }
  0x85   :  { %v147_v46 = vadd.f32 %v110_v43, %v99_v45  ;;  %v115_v47 = vpop.permute.xlu1 %114 }
  0x86   :  { %v61_v48 = vpop.permute.xlu0 %60 }
  0x87   :  { %v100_v49 = vmul.f32 %v833_v42, %v61_v48  ;;  %1086 = vtanh.f32 %v147_v46 }
  0x89   :  { %v148_v50 = vadd.f32 %v115_v47, %v100_v49  ;;  %v71_v51 = vpop.permute.xlu1 %70 }
  0x8a   :  { %v66_v52 = vpop.permute.xlu0 %65  ;;  %v102_v53 = vmul.f32 %v833_v42, %v71_v51 }
  0x8b   :  { %1088 = vtanh.f32 %v148_v50  ;;  %v101_v54 = vmul.f32 %v833_v42, %v66_v52 }
  0x8d   :  { %v125_v55 = vpop.permute.xlu1 %124 }
  0x8e   :  { %v120_v56 = vpop.permute.xlu0 %119  ;;  %v150_v57 = vadd.f32 %v125_v55, %v102_v53 }
  0x8f   :  { %v149_v58 = vadd.f32 %v120_v56, %v101_v54 }
  0x90   :  { %1090 = vtanh.f32 %v150_v57 }
  0x91   :  { %1092 = vtanh.f32 %v149_v58  ;;  %v81_v59 = vpop.permute.xlu1 %80  ;;  %v1087_v61 = vpop.eup %1086 }
  0x92   :  { %v76_v60 = vpop.permute.xlu0 %75  ;;  %v104_v63 = vmul.f32 %v833_v42, %v81_v59 }
  0x93   :  { %v103_v0 = vmul.f32 %v833_v42, %v76_v60 }
  0x95   :  { %v1089_v62 = vpop.eup %1088  ;;  %v135_v1 = vpop.permute.xlu1 %134 }
  0x96   :  { %v130_v2 = vpop.permute.xlu0 %129  ;;  %v1019_v3 = vpack.c.bf16 %v1089_v62, %v1087_v61  ;;  %v152_v4 = vadd.f32 %v135_v1, %v104_v63 }
  0x97   :  { %v151_v5 = vadd.f32 %v130_v2, %v103_v0 }
  0x98   :  { %1020 = vmatprep.subr.bf16.mxu0 %v1019_v3  ;;  %1094 = vtanh.f32 %v152_v4  ;;  %v359_v4 = vld [vmem:[%s1474_s5 + $0x10] sm:$0xff] }
  0x99   :  { %1022 = vmatpush3.bf16.msra.mxu0 %v1019_v3  ;;  %1096 = vtanh.f32 %v151_v5  ;;  %v91_v6 = vpop.permute.xlu1 %90  ;;  %v358_v3 = vld [vmem:[%s1474_s5 + $0x8] sm:$0xff]  ;;  %v360_v5 = vld [vmem:[%s1474_s5 + $0x18] sm:$0xff] }
  0x9a   :  { %v86_v7 = vpop.permute.xlu0 %85  ;;  %v1091_v8 = vpop.eup %1090  ;;  %v106_v10 = vmul.f32 %v833_v42, %v91_v6  ;;  %v361_v6 = vld [vmem:[%s1474_s5 + $0x20] sm:$0xff] }
  0x9b   :  { %v1093_v9 = vpop.eup %1092  ;;  %v105_v11 = vmul.f32 %v833_v42, %v86_v7  ;;  %v362_v7 = vld [vmem:[%s1474_s5 + $0x28] sm:$0xff] }
  0x9c   :  { %v1023_v12 = vpack.c.bf16 %v1091_v8, %v1093_v9  ;;  %v363_v8 = vld [vmem:[%s1474_s5 + $0x30] sm:$0xff]  ;;  %v364_v9 = vld [vmem:[%s1474_s5 + $0x38] sm:$0xff] }
  0x9d   :  { %v145_v13 = vpop.permute.xlu1 %144 }
  0x9e   :  { %v140_v14 = vpop.permute.xlu0 %139  ;;  %v154_v15 = vadd.f32 %v145_v13, %v106_v10  ;;  %1024 = vmatprep.subr.bf16.mxu0 %v1023_v12  ;;  %v550_v10 = vld [vmem:[%s1476_s7] sm:$0xff] }
  0x9f   :  { %v153_v16 = vadd.f32 %v140_v14, %v105_v11  ;;  %1026 = vmatpush3.bf16.msra.mxu0 %v1023_v12 }
  0xa0   :  { %1098 = vtanh.f32 %v154_v15 }
  0xa1   :  { %1100 = vtanh.f32 %v153_v16  ;;  %v187_v31 = vpop.permute.xlu1 %186 }
  0xa2   :  { %v1095_v17 = vpop.eup %1094  ;;  %v182_v32 = vpop.permute.xlu0 %181 }
  0xa3   :  { %v1097_v18 = vpop.eup %1096 }
  0xa4   :  { %v1027_v19 = vpack.c.bf16 %v1095_v17, %v1097_v18 }
  0xa5   :  { %v197_v33 = vpop.permute.xlu1 %196 }
  0xa6   :  { %1028 = vmatprep.subr.bf16.mxu0 %v1027_v19  ;;  %v192_v35 = vpop.permute.xlu0 %191 }
  0xa7   :  { %1030 = vmatpush3.bf16.msra.mxu0 %v1027_v19 }
  0xa9   :  { %v207_v42 = vpop.permute.xlu1 %206 }
  0xaa   :  { %v1099_v20 = vpop.eup %1098  ;;  %v202_v44 = vpop.permute.xlu0 %201 }
  0xab   :  { %v1101_v21 = vpop.eup %1100 }
  0xac   :  { %v1031_v22 = vpack.c.bf16 %v1099_v20, %v1101_v21 }
  0xad   :  { %v217_v49 = vpop.permute.xlu1 %216 }
  0xae   :  { %1032 = vmatprep.subr.bf16.mxu0 %v1031_v22  ;;  %v212_v52 = vpop.permute.xlu0 %211 }
  0xaf   :  { %1034 = vmatpush3.bf16.msra.mxu0 %v1031_v22 }
  0xb1   :  { %v381_v11 = vpop.permute.xlu1 %380 }
  0xb2   :  { %933 = vmatmul.mubr.msk.f32.vlgmr.msra.gmra.mrb[0].mxu0 %vm219_vm0, %v164_v23  ;;  %v376_v12 = vpop.permute.xlu0 %375 }
  0xb3   :  { %935 = vmatprep.mubr.msk.f32.mxu0 %vm219_vm0, %v165_v24 }
  0xb5   :  { %v391_v13 = vpop.permute.xlu1 %390 }
  0xb6   :  { %936 = vmatmul.mubr.msk.f32.gmra.mrb[2].mxu0 %vm219_vm0, %v166_v25  ;;  %v386_v15 = vpop.permute.xlu0 %385 }
  0xb7   :  { %938 = vmatprep.mubr.msk.f32.mxu0 %vm219_vm0, %v167_v26 }
  0xb9   :  { %v401_v22 = vpop.permute.xlu1 %400 }
  0xba   :  { %939 = vmatmul.mubr.msk.f32.gmra.mrb[4].mxu0 %vm219_vm0, %v168_v27  ;;  %v396_v24 = vpop.permute.xlu0 %395 }
  0xbb   :  { %941 = vmatprep.mubr.msk.f32.mxu0 %vm219_vm0, %v169_v28 }
  0xbe   :  { %942 = vmatmul.mubr.msk.f32.gmra.mrb[6].mxu0 %vm219_vm0, %v170_v29  ;;  %v411_v29 = vpop.permute.xlu1 %410 }
  0xbf   :  { %988 = vmatprep.mubr.msk.f32.mxu0 %vm219_vm0, %v550_v10 }
 0x185   :  { %v934_v34 = vpop.f32.mrb[0].mxu0 }
 0x186   :  { %v316_v36 = vadd.f32 %v934_v34, %v187_v31  ;;  %v310_v37 = vpop.f32.mrb[1].mxu0 }
 0x187   :  { %v311_v38 = vadd.f32 %v310_v37, %v182_v32  ;;  %v406_v32 = vpop.permute.xlu0 %405 }
 0x188   :  { %1102 = vtanh.f32 %v316_v36 }
 0x189   :  { %1104 = vtanh.f32 %v311_v38  ;;  %v937_v39 = vpop.f32.mrb[2].mxu0 }
 0x18a   :  { %v326_v40 = vadd.f32 %v937_v39, %v197_v33  ;;  %v320_v41 = vpop.f32.mrb[3].mxu0 }
 0x18b   :  { %v321_v43 = vadd.f32 %v320_v41, %v192_v35 }
 0x18c   :  { %1106 = vtanh.f32 %v326_v40 }
 0x18d   :  { %1108 = vtanh.f32 %v321_v43  ;;  %v940_v45 = vpop.f32.mrb[4].mxu0 }
 0x18e   :  { %v336_v46 = vadd.f32 %v940_v45, %v207_v42  ;;  %v330_v47 = vpop.f32.mrb[5].mxu0 }
 0x18f   :  { %v331_v48 = vadd.f32 %v330_v47, %v202_v44  ;;  %v551_v47 = vld [vmem:[%s1476_s7 + $0x8] sm:$0xff] }
 0x190   :  { %1110 = vtanh.f32 %v336_v46 }
 0x191   :  { %1112 = vtanh.f32 %v331_v48  ;;  %v943_v50 = vpop.f32.mrb[6].mxu0  ;;  %v552_v48 = vld [vmem:[%s1476_s7 + $0x10] sm:$0xff] }
 0x192   :  { %v1103_v51 = vpop.eup %1102  ;;  %v346_v53 = vadd.f32 %v943_v50, %v217_v49  ;;  %v340_v54 = vpop.f32.mrb[7].mxu0  ;;  %v553_v49 = vld [vmem:[%s1476_s7 + $0x18] sm:$0xff]  ;;  %v554_v50 = vld [vmem:[%s1476_s7 + $0x20] sm:$0xff] }
 0x193   :  { %v1105_v55 = vpop.eup %1104  ;;  %v341_v56 = vadd.f32 %v340_v54, %v212_v52  ;;  %v556_v52 = vld [vmem:[%s1476_s7 + $0x30] sm:$0xff]  ;;  %v1175_v54 = vmov 0.0|0.0  }
 0x194   :  { %1114 = vtanh.f32 %v346_v53  ;;  %v1035_v57 = vpack.c.bf16 %v1103_v51, %v1105_v55  ;;  %v555_v51 = vld [vmem:[%s1476_s7 + $0x28] sm:$0xff]  ;;  %v557_v53 = vld [vmem:[%s1476_s7 + $0x38] sm:$0xff]  ;;  %v1177_v55 = vmov 0.0  }
 0x195   :  { %1116 = vtanh.f32 %v341_v56  ;;  %v574_v56 = vpop.permute.xlu1 %573 }
 0x196   :  { %v1107_v58 = vpop.eup %1106  ;;  %1036 = vmatprep.subr.bf16.mxu1 %v1035_v57 }
 0x197   :  { %v1109_v59 = vpop.eup %1108  ;;  %1038 = vmatpush3.bf16.msra.mxu1 %v1035_v57  ;;  %v569_v57 = vpop.permute.xlu0 %568 }
 0x198   :  { %v1039_v60 = vpack.c.bf16 %v1107_v58, %v1109_v59 }
 0x199   :  { %v584_v58 = vpop.permute.xlu1 %583 }
 0x19a   :  { %v1111_v61 = vpop.eup %1110  ;;  %1040 = vmatprep.subr.bf16.mxu1 %v1039_v60 }
 0x19b   :  { %v1113_v62 = vpop.eup %1112  ;;  %1042 = vmatpush3.bf16.msra.mxu1 %v1039_v60  ;;  %v579_v60 = vpop.permute.xlu0 %578 }
 0x19c   :  { %v1043_v63 = vpack.c.bf16 %v1111_v61, %v1113_v62 }
 0x19e   :  { %v1115_v0 = vpop.eup %1114  ;;  %1044 = vmatprep.subr.bf16.mxu1 %v1043_v63 }
 0x19f   :  { %v1117_v1 = vpop.eup %1116  ;;  %1046 = vmatpush3.bf16.msra.mxu1 %v1043_v63 }
 0x1a0   :  { %v1047_v2 = vpack.c.bf16 %v1115_v0, %v1117_v1 }
 0x1a2   :  { %1048 = vmatprep.subr.bf16.mxu1 %v1047_v2 }
 0x1a3   :  { %1050 = vmatpush3.bf16.msra.mxu1 %v1047_v2 }
 0x1a4   :  { %1067 = vmatprep.subr.bf16.mxu1 %v1175_v54 }
 0x1a6   :  { %961 = vmatmul.mubr.msk.f32.vlgmr.msra.gmra.mrb[0].mxu1 %vm219_vm0, %v358_v3  ;;  %v594_v3 = vpop.permute.xlu1 %593 }
 0x1a7   :  { %963 = vmatprep.mubr.msk.f32.mxu1 %vm219_vm0, %v359_v4 }
 0x1aa   :  { %964 = vmatmul.mubr.msk.f32.gmra.mrb[2].mxu1 %vm219_vm0, %v360_v5  ;;  %v589_v5 = vpop.permute.xlu0 %588  ;;  %v604_v10 = vpop.permute.xlu1 %603 }
 0x1ab   :  { %966 = vmatprep.mubr.msk.f32.mxu1 %vm219_vm0, %v361_v6 }
 0x1ae   :  { %967 = vmatmul.mubr.msk.f32.gmra.mrb[4].mxu1 %vm219_vm0, %v362_v7 }
 0x1af   :  { %969 = vmatprep.mubr.msk.f32.mxu1 %vm219_vm0, %v363_v8 }
 0x1b2   :  { %970 = vmatmul.mubr.msk.f32.gmra.mrb[6].mxu1 %vm219_vm0, %v364_v9 }
 0x1b3   :  { %1016 = vmatprep.mubr.msk.f32.mxu1 %vm1176_vm1, %v1177_v55 }
 0x279   :  { %v962_v14 = vpop.f32.mrb[0].mxu1 }
 0x27a   :  { %v509_v16 = vadd.f32 %v962_v14, %v381_v11  ;;  %v503_v17 = vpop.f32.mrb[1].mxu1 }
 0x27b   :  { %v504_v18 = vadd.f32 %v503_v17, %v376_v12 }
 0x27c   :  { %1118 = vtanh.f32 %v509_v16 }
 0x27d   :  { %1120 = vtanh.f32 %v504_v18  ;;  %v965_v19 = vpop.f32.mrb[2].mxu1 }
 0x27e   :  { %v519_v20 = vadd.f32 %v965_v19, %v391_v13  ;;  %v513_v21 = vpop.f32.mrb[3].mxu1  ;;  %v599_v13 = vpop.permute.xlu0 %598 }
 0x27f   :  { %v514_v23 = vadd.f32 %v513_v21, %v386_v15 }
 0x280   :  { %1122 = vtanh.f32 %v519_v20 }
 0x281   :  { %1124 = vtanh.f32 %v514_v23  ;;  %v968_v25 = vpop.f32.mrb[4].mxu1 }
 0x282   :  { %v529_v26 = vadd.f32 %v968_v25, %v401_v22  ;;  %v523_v27 = vpop.f32.mrb[5].mxu1 }
 0x283   :  { %v524_v28 = vadd.f32 %v523_v27, %v396_v24 }
 0x284   :  { %1126 = vtanh.f32 %v529_v26 }
 0x285   :  { %1128 = vtanh.f32 %v524_v28  ;;  %v971_v30 = vpop.f32.mrb[6].mxu1  ;;  %v743_v28 = vld [vmem:[%s1469_s0] sm:$0x3] }
 0x286   :  { %v1119_v31 = vpop.eup %1118  ;;  %v539_v33 = vadd.f32 %v971_v30, %v411_v29  ;;  %v533_v34 = vpop.f32.mrb[7].mxu1 }
 0x287   :  { %v1121_v35 = vpop.eup %1120  ;;  %v534_v36 = vadd.f32 %v533_v34, %v406_v32 }
 0x288   :  { %1130 = vtanh.f32 %v539_v33  ;;  %v1051_v37 = vpack.c.bf16 %v1119_v31, %v1121_v35 }
 0x289   :  { %1132 = vtanh.f32 %v534_v36 }
 0x28a   :  { %v1123_v38 = vpop.eup %1122  ;;  %1052 = vmatprep.subr.bf16.mxu0 %v1051_v37 }
 0x28b   :  { %v1125_v39 = vpop.eup %1124  ;;  %1054 = vmatpush3.bf16.msra.mxu0 %v1051_v37 }
 0x28c   :  { %v1055_v40 = vpack.c.bf16 %v1123_v38, %v1125_v39 }
 0x28e   :  { %v1127_v41 = vpop.eup %1126  ;;  %1056 = vmatprep.subr.bf16.mxu0 %v1055_v40 }
 0x28f   :  { %v1129_v42 = vpop.eup %1128  ;;  %1058 = vmatpush3.bf16.msra.mxu0 %v1055_v40 }
 0x290   :  { %v1059_v43 = vpack.c.bf16 %v1127_v41, %v1129_v42 }
 0x292   :  { %v1131_v44 = vpop.eup %1130  ;;  %1060 = vmatprep.subr.bf16.mxu0 %v1059_v43 }
 0x293   :  { %v1133_v45 = vpop.eup %1132  ;;  %1062 = vmatpush3.bf16.msra.mxu0 %v1059_v43 }
 0x294   :  { %v1063_v46 = vpack.c.bf16 %v1131_v44, %v1133_v45 }
 0x296   :  { %1064 = vmatprep.subr.bf16.mxu0 %v1063_v46 }
 0x297   :  { %1066 = vmatpush3.bf16.msra.mxu0 %v1063_v46 }
 0x29a   :  { %989 = vmatmul.mubr.msk.f32.vlgmr.msra.gmra.mrb[8].mxu0 %vm219_vm0, %v551_v47 }
 0x29b   :  { %991 = vmatprep.mubr.msk.f32.mxu0 %vm219_vm0, %v552_v48 }
 0x29e   :  { %992 = vmatmul.mubr.msk.f32.gmra.mrb[10].mxu0 %vm219_vm0, %v553_v49 }
 0x29f   :  { %994 = vmatprep.mubr.msk.f32.mxu0 %vm219_vm0, %v554_v50 }
 0x2a2   :  { %995 = vmatmul.mubr.msk.f32.gmra.mrb[12].mxu0 %vm219_vm0, %v555_v51 }
 0x2a3   :  { %997 = vmatprep.mubr.msk.f32.mxu0 %vm219_vm0, %v556_v52 }
 0x2a6   :  { %998 = vmatmul.mubr.msk.f32.gmra.mrb[14].mxu0 %vm219_vm0, %v557_v53 }
 0x36d   :  { %v990_v59 = vpop.f32.mrb[8].mxu0 }
 0x36e   :  { %v702_v61 = vadd.f32 %v990_v59, %v574_v56  ;;  %v696_v62 = vpop.f32.mrb[9].mxu0 }
 0x36f   :  { %v697_v63 = vadd.f32 %v696_v62, %v569_v57 }
 0x370   :  { %1134 = vtanh.f32 %v702_v61 }
 0x371   :  { %1136 = vtanh.f32 %v697_v63  ;;  %v993_v0 = vpop.f32.mrb[10].mxu0 }
 0x372   :  { %v712_v1 = vadd.f32 %v993_v0, %v584_v58  ;;  %v706_v2 = vpop.f32.mrb[11].mxu0 }
 0x373   :  { %v707_v4 = vadd.f32 %v706_v2, %v579_v60 }
 0x374   :  { %1138 = vtanh.f32 %v712_v1 }
 0x375   :  { %1140 = vtanh.f32 %v707_v4  ;;  %v996_v6 = vpop.f32.mrb[12].mxu0 }
 0x376   :  { %v722_v7 = vadd.f32 %v996_v6, %v594_v3  ;;  %v716_v8 = vpop.f32.mrb[13].mxu0 }
 0x377   :  { %v717_v9 = vadd.f32 %v716_v8, %v589_v5 }
 0x378   :  { %1142 = vtanh.f32 %v722_v7 }
 0x379   :  { %1144 = vtanh.f32 %v717_v9  ;;  %v999_v11 = vpop.f32.mrb[14].mxu0 }
 0x37a   :  { %v1135_v12 = vpop.eup %1134  ;;  %v732_v14 = vadd.f32 %v999_v11, %v604_v10  ;;  %v726_v15 = vpop.f32.mrb[15].mxu0 }
 0x37b   :  { %v1137_v16 = vpop.eup %1136  ;;  %v727_v17 = vadd.f32 %v726_v15, %v599_v13 }
 0x37c   :  { %1146 = vtanh.f32 %v732_v14  ;;  %v1068_v18 = vpack.c.bf16 %v1135_v12, %v1137_v16 }
 0x37d   :  { %1148 = vtanh.f32 %v727_v17 }
 0x37e   :  { %v1139_v19 = vpop.eup %1138  ;;  %1069 = vmatpush3.bf16.msra.mxu1 %v1068_v18 }
 0x37f   :  { %v1141_v20 = vpop.eup %1140  ;;  %1070 = vmatprep.subr.bf16.mxu1 %v1175_v54 }
 0x380   :  { %v1071_v21 = vpack.c.bf16 %v1139_v19, %v1141_v20 }
 0x382   :  { %v1143_v22 = vpop.eup %1142  ;;  %1072 = vmatpush3.bf16.msra.mxu1 %v1071_v21 }
 0x383   :  { %v1145_v23 = vpop.eup %1144  ;;  %1073 = vmatprep.subr.bf16.mxu1 %v1175_v54 }
 0x384   :  { %v1074_v24 = vpack.c.bf16 %v1143_v22, %v1145_v23 }
 0x386   :  { %v1147_v25 = vpop.eup %1146  ;;  %1075 = vmatpush3.bf16.msra.mxu1 %v1074_v24 }
 0x387   :  { %v1149_v26 = vpop.eup %1148  ;;  %1076 = vmatprep.subr.bf16.mxu1 %v1175_v54 }
 0x388   :  { %v1077_v27 = vpack.c.bf16 %v1147_v25, %v1149_v26 }
 0x38a   :  { %1078 = vmatpush3.bf16.msra.mxu1 %v1077_v27 }
 0x38d   :  { %1017 = vmatmul.mubr.msk.f32.vlgmr.msra.gmra.mrb[8].mxu1 %vm219_vm0, %v743_v28 }
 0x460   :  { %v813_v29 = vpop.f32.mrb[8].mxu1 }
 0x461   :  { %818 = vst.msk [vmem:[#allocation2] sm:$0x3] %vm817_vm2, %v813_v29  ;;  %v1018_v30 = vpop.f32.mrb[9].mxu1 }
 0x462   :  { %1161 = shalt.err (!%p1158_p4)
}
 0x463   :  { %s1162_s0 = scalar_lea.hbm %s1479_s10, 32 }
 0x464   :  { %p1163_p5 = scmp.ne.s32.totalorder %s1479_s10, %s1162_s0  ;;  %p1166_p6 = scmp.lt.u32.totalorder %s1162_s0, %s1479_s10 }
 0x466   :  { %p1168_p7 = pnand %p1166_p6, %p1163_p5 }
 0x468   :  { %1171 = shalt.err (!%p1168_p7)
}
 0x469   :  { %828 = dma.vmem_to_hbm [thread:$0]  %s826_s24, 32, %s1479_s10, [#allocation3]  }
 0x46a   :  { %1172 = dma.done.wait [#allocation3], 32  }
 0x46b   :  { %1173 = vsyncadd [#allocation3], 4294967264 }
 0x46c   :  { %832 = vsyncpa [#allocation3], 1 }

</bundles_post_ra>
